<compile_context>
chip_gen: v5e
topology: v5e:2x2
jax: 0.10.0
libtpu: 0.0.40
codegen_flags: <defaults>
</compile_context>

<pallas_src>
import functools

import jax
import jax.numpy as jnp
from jax.experimental import pallas as pl
from jax.experimental.pallas import tpu as pltpu


def _round_up(x, n):
    return -(-x // n) * n


# Capability check (review: no eager try/except around an executed pallas_call).
_HAS_BUFFERED = hasattr(pl, "Buffered")


def _hw_vmem_capacity():
    """Physical VMEM per TensorCore; conservative fallback if the query is unavailable."""
    try:
        return int(pltpu.get_tpu_info().vmem_capacity_bytes)
    except Exception:
        return 64 << 20  # v7x per-TC size; safe lower bound for v5e/v6e too


def _linear_kernel(x_ref, wt_ref, b_ref, o_ref, *, compute_dtype):
    # x_ref: (tm, K)  wt_ref: (K, N_pad)  b_ref: (1, N_pad)  o_ref: (tm, N_pad)
    x = x_ref[...]
    if compute_dtype is not None and x.dtype != compute_dtype:
        x = x.astype(compute_dtype)  # in-kernel cast: VPU work hidden under the MXU
    acc = jnp.dot(x, wt_ref[...], preferred_element_type=jnp.float32)
    o_ref[...] = (acc + b_ref[...]).astype(o_ref.dtype)


def _choose_tile(M, K, N_pad, x_isize, w_isize, out_isize, vmem_capacity, weight_bufs):
    """Row tile: as large as the VMEM budget allows, MXU-aligned, hard floor at 128 rows."""
    budget = int(0.75 * vmem_capacity)          # ~48 MiB on v7x (64 MiB/TC), ~96 MiB on v5e/v6e
    tm_max = 1024 if vmem_capacity >= (96 << 20) else 512
    align = 256                                  # 256 for v6e/v7x MXU; also a multiple of v5e's 128

    resident = weight_bufs * (K * N_pad * w_isize + 8 * N_pad * 4)   # W^T (+bias) as buffered
    per_row = 2 * K * x_isize + 2 * N_pad * out_isize                # double-buffered X + out rows
    avail = budget - resident
    tm_cap = max(128, avail // per_row)          # hard floor: never collapse to tiny tiles

    if M <= 128:
        # Tiny problem: cover all rows with a single tile.
        return int(_round_up(max(M, 8), 8))

    tm = min(tm_max, tm_cap)
    tm = max(128, (tm // align) * align)         # MXU-aligned, floor 128

    if M <= tm:
        # A single tile would cover everything; split in two when both halves still fill the
        # MXU reasonably, so a 2-TensorCore chip (v7x) gets an even, balanced grid.
        if M >= 2 * 128:
            return int(_round_up(-(-M // 2), 8))
        return int(_round_up(M, 8))

    # Prefer an even number of grid steps ('parallel' axis is sharded across v7x's 2 cores).
    grid_m = -(-M // tm)
    if grid_m > 1 and grid_m % 2 == 1:
        tm_even = _round_up(-(-M // (grid_m + 1)), align)
        if 128 <= tm_even <= tm:
            tm = tm_even
    return int(tm)


def _vmem_limit(tm, K, N_pad, x_isize, w_isize, out_isize, weight_bufs, vmem_capacity):
    need = (weight_bufs * K * N_pad * w_isize          # resident W^T (actual buffer count)
            + weight_bufs * 8 * N_pad * 4              # bias block (8-sublane padded)
            + 2 * tm * K * x_isize                     # double-buffered X tiles
            + 2 * tm * N_pad * out_isize)              # double-buffered output tiles
    cap = int(0.85 * vmem_capacity)                    # headroom for compiler scratch/semaphores
    return int(min(max(int(1.25 * need) + (2 << 20), 16 << 20), cap))


def _pallas_linear(x2d, w_t, b2d, out_dtype, compute_dtype, tm, vmem_limit):
    M8, K = x2d.shape
    N_pad = w_t.shape[1]
    grid_m = pl.cdiv(M8, tm)                           # ragged last block is fine (masked stores)

    resident_kwargs = {"pipeline_mode": pl.Buffered(1)} if _HAS_BUFFERED else {}

    cost = pl.CostEstimate(
        flops=2 * M8 * K * N_pad,
        transcendentals=0,
        bytes_accessed=(x2d.size * x2d.dtype.itemsize
                        + w_t.size * w_t.dtype.itemsize
                        + b2d.size * b2d.dtype.itemsize
                        + M8 * N_pad * jnp.dtype(out_dtype).itemsize),
    )

    kernel = functools.partial(_linear_kernel, compute_dtype=compute_dtype)

    return pl.pallas_call(
        kernel,
        out_shape=jax.ShapeDtypeStruct((M8, N_pad), out_dtype),
        grid_spec=pltpu.PrefetchScalarGridSpec(
            num_scalar_prefetch=0,
            grid=(grid_m,),
            in_specs=[
                pl.BlockSpec((tm, K), lambda i: (i, 0)),                        # X row tile
                pl.BlockSpec((K, N_pad), lambda i: (0, 0), **resident_kwargs),  # resident W^T
                pl.BlockSpec((1, N_pad), lambda i: (0, 0), **resident_kwargs),  # resident bias
            ],
            out_specs=pl.BlockSpec((tm, N_pad), lambda i: (i, 0)),              # lane-dense stores
        ),
        compiler_params=pltpu.CompilerParams(
            dimension_semantics=("parallel",),
            vmem_limit_bytes=vmem_limit,
        ),
        cost_estimate=cost,
    )(x2d, w_t, b2d)


def prepare_code_concat_params(weight, bias, compute_dtype=jnp.bfloat16):
    """One-time parameter prep (do this at init, not per forward call).

    weight: (embed_dim, topk*embed_dim) nn.Linear layout (out, in)
    Returns (W^T padded to (K, N_pad) in compute dtype, bias as (1, N_pad) f32).
    """
    N, K = weight.shape
    N_pad = _round_up(N, 128)
    w_t = weight.T                                     # transpose once in HBM, amortized forever
    if N_pad != N:
        w_t = jnp.pad(w_t, ((0, 0), (0, N_pad - N)))
    if compute_dtype is not None:
        w_t = w_t.astype(compute_dtype)
    b = bias.astype(jnp.float32)
    if N_pad != N:
        b = jnp.pad(b, (0, N_pad - N))
    return w_t, b.reshape(1, N_pad)


def code_concat_block_apply(x, w_t, b2d, out_features, compute_dtype=jnp.bfloat16):
    """Forward pass of CodeConcatBlock given pre-prepared parameters.

    x: (bs, m, topk, embed_dim); returns (bs, m, out_features) in x.dtype.
    """
    bs, m, topk, embed_dim = x.shape
    K = topk * embed_dim
    M = bs * m
    N = out_features
    N_pad = w_t.shape[1]
    out_dtype = x.dtype

    x2d = x.reshape(M, K)                     # no dtype cast here; cast happens inside the kernel
    M8 = _round_up(M, 8)
    if M8 != M:                               # pad at most 7 rows (not up to tm) -> negligible HBM
        x2d = jnp.pad(x2d, ((0, M8 - M), (0, 0)))

    weight_bufs = 1 if _HAS_BUFFERED else 2
    vmem_capacity = _hw_vmem_capacity()
    x_isize = x2d.dtype.itemsize
    w_isize = w_t.dtype.itemsize
    o_isize = jnp.dtype(out_dtype).itemsize

    tm = _choose_tile(M8, K, N_pad, x_isize, w_isize, o_isize, vmem_capacity, weight_bufs)
    vmem_limit = _vmem_limit(tm, K, N_pad, x_isize, w_isize, o_isize, weight_bufs, vmem_capacity)

    y2d = _pallas_linear(x2d, w_t, b2d, out_dtype, compute_dtype, tm, vmem_limit)
    return y2d[:M, :N].reshape(bs, m, N)


def make_code_concat_block(weight, bias, compute_dtype=jnp.bfloat16):
    """Returns a forward callable with parameters prepared once (recommended entry point)."""
    w_t, b2d = prepare_code_concat_params(weight, bias, compute_dtype)
    n_out = weight.shape[0]

    def apply(x):
        return code_concat_block_apply(x, w_t, b2d, n_out, compute_dtype)

    return apply


def code_concat_block(x, weight, bias, *, compute_dtype=jnp.bfloat16):
    """Convenience one-shot wrapper (prepares params per call; prefer make_code_concat_block)."""
    return make_code_concat_block(weight, bias, compute_dtype)(x)


if __name__ == "__main__":
    # Small shapes consistent with the module.
    bs, m, topk, embed_dim = 2, 8, 4, 32

    key = jax.random.PRNGKey(0)
    kx, kw, kb = jax.random.split(key, 3)

    x = jax.random.normal(kx, (bs, m, topk, embed_dim), dtype=jnp.float32)
    fan_in = topk * embed_dim
    bound = 1.0 / (fan_in ** 0.5)
    weight = jax.random.uniform(kw, (embed_dim, fan_in), minval=-bound, maxval=bound,
                                dtype=jnp.float32)
    bias = jax.random.uniform(kb, (embed_dim,), minval=-bound, maxval=bound,
                              dtype=jnp.float32)

    # Reference: same math as nn.Linear on the flattened view.
    ref = x.reshape(bs, m, fan_in) @ weight.T + bias

    # 1) f32 operands (compute_dtype=None): tight check.
    fwd_f32 = make_code_concat_block(weight, bias, compute_dtype=None)
    y_f32 = fwd_f32(x)
    jax.block_until_ready(y_f32)
    assert y_f32.shape == (bs, m, embed_dim)
    assert jnp.allclose(y_f32, ref, atol=5e-3, rtol=5e-3), \
        float(jnp.max(jnp.abs(y_f32 - ref)))

    # 2) default bf16 operands (f32 accumulate): looser tolerance for expected precision loss.
    fwd_bf16 = make_code_concat_block(weight, bias, compute_dtype=jnp.bfloat16)
    y_bf16 = fwd_bf16(x)
    jax.block_until_ready(y_bf16)
    assert y_bf16.shape == (bs, m, embed_dim)
    assert jnp.allclose(y_bf16, ref, atol=5e-2, rtol=5e-2), \
        float(jnp.max(jnp.abs(y_bf16 - ref)))

    print("KERNEL_OK")
</pallas_src>

<mosaic_0001>
module attributes {stable_mosaic.version = 11 : i64} {
  func.func @_linear_kernel(%arg0: i32, %arg1: memref<16x128xf32, #tpu.memory_space<vmem>>, %arg2: memref<128x128xf32, #tpu.memory_space<vmem>>, %arg3: memref<1x128xf32, #tpu.memory_space<vmem>>, %arg4: memref<16x128xf32, #tpu.memory_space<vmem>>) attributes {dimension_semantics = [#tpu.dimension_semantics<parallel>], iteration_bounds = array<i64: 1>, scalar_prefetch = 0 : i64, scratch_operands = 0 : i64, tpu.core_type = #tpu.core_type<tc>, window_params = [{transform_indices = @transform_0, window_bounds = array<i64: 16, 128>}, {pipeline_mode = #tpu.pipeline_mode<synchronous>, transform_indices = @transform_1, window_bounds = array<i64: 128, 128>}, {pipeline_mode = #tpu.pipeline_mode<synchronous>, transform_indices = @transform_2, window_bounds = array<i64: 1, 128>}, {transform_indices = @transform_3, window_bounds = array<i64: 16, 128>}]} {
    %c0 = arith.constant 0 : index
    %c0_0 = arith.constant 0 : index
    %0 = vector.load %arg1[%c0, %c0_0] : memref<16x128xf32, #tpu.memory_space<vmem>>, vector<16x128xf32>
    %c0_1 = arith.constant 0 : index
    %c0_2 = arith.constant 0 : index
    %1 = vector.load %arg2[%c0_1, %c0_2] : memref<128x128xf32, #tpu.memory_space<vmem>>, vector<128x128xf32>
    %cst = arith.constant dense<0.000000e+00> : vector<16x128xf32>
    %2 = tpu.matmul %0, %1, %cst {dimension_numbers = #tpu.dot_dimension_numbers<[1], [0], [0], [1], [0, 0, 1, 1], [], []>} : vector<16x128xf32>, vector<128x128xf32>, vector<16x128xf32> -> vector<16x128xf32>
    %c0_3 = arith.constant 0 : index
    %c0_4 = arith.constant 0 : index
    %3 = vector.load %arg3[%c0_3, %c0_4] : memref<1x128xf32, #tpu.memory_space<vmem>>, vector<1x128xf32>
    %4 = vector.broadcast %3 : vector<1x128xf32> to vector<16x128xf32>
    %5 = arith.addf %2, %4 : vector<16x128xf32>
    %c0_5 = arith.constant 0 : index
    %c0_6 = arith.constant 0 : index
    %6 = vector.load %arg4[%c0_5, %c0_6] : memref<16x128xf32, #tpu.memory_space<vmem>>, vector<16x128xf32>
    tpu.vector_store %arg4[%c0_5, %c0_6], %5 {strides = array<i32>} : memref<16x128xf32, #tpu.memory_space<vmem>>, vector<16x128xf32>,
    return
  }
  func.func @transform_0(%arg0: i32) -> (i32, i32) {
    %c0_i32 = arith.constant 0 : i32
    %c0_i32_0 = arith.constant 0 : i32
    return %arg0, %c0_i32 : i32, i32
  }
  func.func @transform_1(%arg0: i32) -> (i32, i32) {
    %c0_i32 = arith.constant 0 : i32
    %c0_i32_0 = arith.constant 0 : i32
    %c0_i32_1 = arith.constant 0 : i32
    return %c0_i32, %c0_i32_0 : i32, i32
  }
  func.func @transform_2(%arg0: i32) -> (i32, i32) {
    %c0_i32 = arith.constant 0 : i32
    %c0_i32_0 = arith.constant 0 : i32
    %c0_i32_1 = arith.constant 0 : i32
    return %c0_i32, %c0_i32_0 : i32, i32
  }
  func.func @transform_3(%arg0: i32) -> (i32, i32) {
    %c0_i32 = arith.constant 0 : i32
    %c0_i32_0 = arith.constant 0 : i32
    return %arg0, %c0_i32 : i32, i32
  }
}

</mosaic_0001>

<bundles_post_ra>
// kernel: tpu_custom_call.1
= control target key start
LH: loop header
LB: loop body
LE: loop exit
PB: predicated region body
PF: predicated region fallthrough
CT: control target
= control target key end

     0   :  { %8 = vsyncpa [#allocation3], 0  ;;  %s260_s0 = inlined_call_operand.hbm [shape: f32[16,128], index: 0, kind: input, shape index: {}]   ;;  %s261_s1 = inlined_call_operand.hbm [shape: f32[128,128], index: 1, kind: input, shape index: {}]   ;;  %s262_s2 = inlined_call_operand.vmem [shape: f32[1,128], index: 2, kind: input, shape index: {}]   ;;  %s263_s3 = inlined_call_operand.hbm [shape: f32[16,128], index: 3, kind: output, shape index: {}]  }
   0x1   :  { %9 = vsyncpa [#allocation6], 0 }
   0x2   :  { %10 = vsyncpa [#allocation4], 0  ;;  %s15_s14 = sshll.u32 %s260_s0, 4  ;;  %s214_s15 = smov [#allocation2]   ;;  %s16_s14 = int_to_ptr.hbm [resolvable:$true] %s15_s14 }
   0x3   :  { %s17_s16 = sshll.u32 %s214_s15, 4  ;;  %s28_s19 = sshll.u32 %s261_s1, 4  ;;  %s18_s16 = int_to_ptr.vmem [resolvable:$true] %s17_s16  ;;  %s29_s19 = int_to_ptr.hbm [resolvable:$true] %s28_s19 }
   0x4   :  { %s215_s20 = smov 128   ;;  %s216_s21 = smov 8  }
   0x5   :  { %23 = dma.hbm_to_vmem [thread:$0]  %s16_s14, 256, %s18_s16, [#allocation3], %s215_s20, %s215_s20, %s216_s21  }
   0x6   :  { %s217_s22 = smov [#allocation5]  }
   0x7   :  { %s30_s23 = sshll.u32 %s217_s22, 4  ;;  %s31_s23 = int_to_ptr.vmem [resolvable:$true] %s30_s23 }
   0x8   :  { %36 = dma.hbm_to_vmem [thread:$0]  %s29_s19, 2048, %s31_s23, [#allocation6], %s215_s20, %s215_s20, %s216_s21  }
   0x9   :  { %208 = dma.done.wait [#allocation3], 256  }
   0xa   :  { %209 = vsyncadd [#allocation3], 4294967040 }
   0xb   :  { %210 = dma.done.wait [#allocation6], 2048  }
   0xc   :  { %211 = vsyncadd [#allocation6], 4294965248  ;;  %v64_v0 = vld [vmem:[#allocation5 + $0x78] sm:$0xff]  ;;  %v63_v1 = vld [vmem:[#allocation5 + $0x70] sm:$0xff]  ;;  %s218_s24 = smov [#allocation7]   ;;  %s100_s28 = sshll.u32 %s263_s3, 4  ;;  %s101_s28 = int_to_ptr.hbm [resolvable:$true] %s100_s28 }
   0xd   :  { %69 = vmatpush.msra.mxu0 %v64_v0  ;;  %114 = vmatpush.msra.mxu1 %v64_v0  ;;  %v62_v2 = vld [vmem:[#allocation5 + $0x68] sm:$0xff]  ;;  %v61_v3 = vld [vmem:[#allocation5 + $0x60] sm:$0xff]  ;;  %v60_v4 = vld [vmem:[#allocation5 + $0x58] sm:$0xff]  ;;  %s98_s25 = sshll.u32 %s218_s24, 4  ;;  %s99_s25 = int_to_ptr.vmem [resolvable:$true] %s98_s25 }
   0xe   :  { %v59_v5 = vld [vmem:[#allocation5 + $0x50] sm:$0xff]  ;;  %v58_v6 = vld [vmem:[#allocation5 + $0x48] sm:$0xff]  ;;  %v57_v7 = vld [vmem:[#allocation5 + $0x40] sm:$0xff] }
   0xf   :  { %70 = vmatpush.msra.mxu0 %v63_v1  ;;  %115 = vmatpush.msra.mxu1 %v63_v1  ;;  %v56_v8 = vld [vmem:[#allocation5 + $0x38] sm:$0xff]  ;;  %v55_v9 = vld [vmem:[#allocation5 + $0x30] sm:$0xff]  ;;  %v54_v10 = vld [vmem:[#allocation5 + $0x28] sm:$0xff] }
  0x10   :  { %v53_v11 = vld [vmem:[#allocation5 + $0x20] sm:$0xff]  ;;  %v52_v12 = vld [vmem:[#allocation5 + $0x18] sm:$0xff]  ;;  %v51_v13 = vld [vmem:[#allocation5 + $0x10] sm:$0xff] }
  0x11   :  { %71 = vmatpush.msra.mxu0 %v62_v2  ;;  %116 = vmatpush.msra.mxu1 %v62_v2  ;;  %v50_v14 = vld [vmem:[#allocation5 + $0x8] sm:$0xff]  ;;  %v49_v15 = vld [vmem:[#allocation5] sm:$0xff]  ;;  %v47_v16 = vld [vmem:[#allocation2] sm:$0xff] }
  0x12   :  { %v48_v17 = vld [vmem:[#allocation2 + $0x8] sm:$0xff]  ;;  %v135_v18 = vld [vmem:[%s262_s2] ss:$0 sm:$0xff] }
  0x13   :  { %72 = vmatpush.msra.mxu0 %v61_v3  ;;  %117 = vmatpush.msra.mxu1 %v61_v3 }
  0x15   :  { %73 = vmatpush.msra.mxu0 %v60_v4  ;;  %118 = vmatpush.msra.mxu1 %v60_v4 }
  0x17   :  { %74 = vmatpush.msra.mxu0 %v59_v5  ;;  %119 = vmatpush.msra.mxu1 %v59_v5 }
  0x19   :  { %75 = vmatpush.msra.mxu0 %v58_v6  ;;  %120 = vmatpush.msra.mxu1 %v58_v6 }
  0x1b   :  { %76 = vmatpush.msra.mxu0 %v57_v7  ;;  %121 = vmatpush.msra.mxu1 %v57_v7 }
  0x1d   :  { %77 = vmatpush.msra.mxu0 %v56_v8  ;;  %122 = vmatpush.msra.mxu1 %v56_v8 }
  0x1f   :  { %78 = vmatpush.msra.mxu0 %v55_v9  ;;  %123 = vmatpush.msra.mxu1 %v55_v9 }
  0x21   :  { %79 = vmatpush.msra.mxu0 %v54_v10  ;;  %124 = vmatpush.msra.mxu1 %v54_v10 }
  0x23   :  { %80 = vmatpush.msra.mxu0 %v53_v11  ;;  %125 = vmatpush.msra.mxu1 %v53_v11 }
  0x25   :  { %81 = vmatpush.msra.mxu0 %v52_v12  ;;  %126 = vmatpush.msra.mxu1 %v52_v12 }
  0x27   :  { %82 = vmatpush.msra.mxu0 %v51_v13  ;;  %127 = vmatpush.msra.mxu1 %v51_v13 }
  0x29   :  { %83 = vmatpush.msra.mxu0 %v50_v14  ;;  %128 = vmatpush.msra.mxu1 %v50_v14 }
  0x2b   :  { %84 = vmatpush.msra.mxu0 %v49_v15  ;;  %129 = vmatpush.msra.mxu1 %v49_v15 }
  0x2c   :  { %85 = vmatmul.f32.vlgmr.msra.gmra.mxu0 %v47_v16  ;;  %88 = vmatmul.f32.vlgmr.msra.gmra.mxu1 %v48_v17 }
  0xa9   :  { %v86_v19 = vpop.f32.mrf.mxu0  ;;  %v89_v20 = vpop.f32.mrf.mxu1 }
  0xaa   :  { %v87_v21 = vadd.f32 %v135_v18, %v86_v19  ;;  %v90_v22 = vadd.f32 %v135_v18, %v89_v20 }
  0xac   :  { %92 = vst [vmem:[#allocation7] sm:$0xff] %v87_v21 }
  0xad   :  { %93 = vst [vmem:[#allocation7 + $0x8] sm:$0xff] %v90_v22 }
  0xae   :  { %106 = dma.vmem_to_hbm [thread:$0]  %s99_s25, 256, %s101_s28, [#allocation4], %s215_s20, %s215_s20, %s216_s21  }
  0xaf   :  { %212 = dma.done.wait [#allocation4], 256  }
  0xb0   :  { %213 = vsyncadd [#allocation4], 4294967040 }
  0xb1   :  { %111 = vsyncpa [#allocation3], 1 }
  0xb2   :  { %112 = vsyncpa [#allocation6], 1 }
  0xb3   :  { %113 = vsyncpa [#allocation4], 1 }

</bundles_post_ra>
